<compile_context>
chip_gen: v6e
topology: v6e:2x2x1
jax: 0.10.0
libtpu: 0.0.40
codegen_flags: <defaults>
</compile_context>

<pallas_src>
import numpy as np
import jax
import jax.numpy as jnp
from jax import lax
from jax.experimental import pallas as pl
from jax.experimental.pallas import tpu as pltpu

EPS = 1e-5          # self.epsilon in the PyTorch module
NEG_BIG = -1e30     # mask value for padded classes
VMEM_LIMIT = 32 * 1024 * 1024


def _round_up(x, m):
    return ((x + m - 1) // m) * m


# ------------------------------------------------------------------
# Kernel A: fused input marry-up + RNN input projection (token-parallel)
#   proj = x @ Wx^T + (1/max(sum_c re_tags, eps)) * (re_tags @ (E @ Wt^T))
# ------------------------------------------------------------------
def marryup_proj_kernel(x_ref, rt_ref, wx_ref, m_ref, out_ref):
    rt = rt_ref[...]                                                 # (TN, C_pad)
    denom = jnp.maximum(jnp.sum(rt, axis=-1, keepdims=True), EPS)    # (TN, 1)
    inv = pl.reciprocal(denom)                                       # exact recip
    proj = jnp.dot(x_ref[...], wx_ref[...],
                   preferred_element_type=jnp.float32)               # (TN, H_pad)
    proj = proj + inv * jnp.dot(rt, m_ref[...],
                                preferred_element_type=jnp.float32)
    out_ref[...] = proj


# ------------------------------------------------------------------
# Kernel B: RNN recurrence + linear head + output marry-up + CE + argmax
#   one grid step per timestep; h lives in VMEM scratch across steps;
#   masked NLL sum accumulated in-kernel -> single scalar output.
# ------------------------------------------------------------------
def rnn_head_kernel(xproj_ref, rt_ref, lbl_ref, whh_ref, wlin_ref, bias_ref,
                    lw_ref, pred_ref, lsum_ref, h_scr, acc_scr):
    t = pl.program_id(0)

    @pl.when(t == 0)
    def _init():
        h_scr[...] = jnp.zeros_like(h_scr)
        acc_scr[...] = jnp.zeros_like(acc_scr)

    # ---- recurrence: h_t = tanh(xproj_t + h_{t-1} @ Whh^T) ----
    h_new = jnp.tanh(
        xproj_ref[0]
        + jnp.dot(h_scr[...], whh_ref[...], preferred_element_type=jnp.float32))
    h_scr[...] = h_new                                               # (B_pad, H_pad)

    # ---- head: scores = h @ Wlin^T + b + re_tags * logits_weights ----
    # padded classes already carry -1e30 inside bias_ref.
    scores = (jnp.dot(h_new, wlin_ref[...], preferred_element_type=jnp.float32)
              + bias_ref[...] + rt_ref[0] * lw_ref[...])             # (B_pad, C_pad)

    # ---- per-token cross-entropy (masked) ----
    m = jnp.max(scores, axis=-1, keepdims=True)
    lse = m + jnp.log(jnp.sum(jnp.exp(scores - m), axis=-1, keepdims=True))
    col = lax.broadcasted_iota(jnp.int32, scores.shape, 1)
    lbl = lbl_ref[0]                                                 # (B_pad, 1) int32, -1 = pad
    onehot = (col == lbl).astype(jnp.float32)
    nll = lse - jnp.sum(scores * onehot, axis=-1, keepdims=True)     # (B_pad, 1)
    valid_f = (lbl >= 0).astype(jnp.float32)
    acc_scr[...] += nll * valid_f

    # ---- argmax (first max) ----
    pred = jnp.min(jnp.where(scores == m, col, scores.shape[-1]),
                   axis=-1, keepdims=True)
    pred_ref[0] = pred.astype(jnp.int32)

    @pl.when(t == pl.num_programs(0) - 1)
    def _fin():
        lsum_ref[...] = jnp.sum(acc_scr[...], axis=0, keepdims=True)  # (1, 1)


# ------------------------------------------------------------------
# Parameter init (deterministic, synthetic)
# ------------------------------------------------------------------
def init_params(key, V, D, Td, C, H):
    ks = jax.random.split(key, 7)
    Din = D + Td
    return dict(
        embed=jax.random.normal(ks[0], (V, D), jnp.float32),
        re_tag_embed=jax.random.normal(ks[1], (C, Td), jnp.float32),
        logits_weights=jax.random.normal(ks[2], (C,), jnp.float32),
        w_ih=jax.random.normal(ks[3], (H, Din), jnp.float32) / np.sqrt(Din),
        w_hh=jax.random.normal(ks[4], (H, H), jnp.float32) / np.sqrt(H),
        w_lin=jax.random.normal(ks[5], (C, H), jnp.float32) / np.sqrt(H),
        b_lin=0.1 * jax.random.normal(ks[6], (C,), jnp.float32),
    )


# ------------------------------------------------------------------
# One-time weight packing: transpose, pad to lane/sublane multiples, and
# pre-fold re_tag_embed @ W_ih_tag^T so the marry-up fuses into the projection.
# ------------------------------------------------------------------
def prepare_weights(params):
    D = params['embed'].shape[1]
    C, Td = params['re_tag_embed'].shape
    H = params['w_hh'].shape[0]
    D_pad = _round_up(D, 128)
    H_pad = _round_up(H, 128)
    C_pad = _round_up(C, 128)

    w_ih = params['w_ih']                                   # (H, D+Td)
    wx_t = jnp.zeros((D_pad, H_pad), jnp.float32).at[:D, :H].set(w_ih[:, :D].T)
    m = params['re_tag_embed'] @ w_ih[:, D:].T              # (C, H)  tiny, done once
    m_p = jnp.zeros((C_pad, H_pad), jnp.float32).at[:C, :H].set(m)
    whh_t = jnp.zeros((H_pad, H_pad), jnp.float32).at[:H, :H].set(params['w_hh'].T)
    wlin_t = jnp.zeros((H_pad, C_pad), jnp.float32).at[:H, :C].set(params['w_lin'].T)

    class_mask = jnp.arange(C_pad) < C
    bias = jnp.where(class_mask,
                     jnp.pad(params['b_lin'], (0, C_pad - C)),
                     NEG_BIG)[None, :].astype(jnp.float32)           # (1, C_pad)
    lw = jnp.pad(params['logits_weights'], (0, C_pad - C))[None, :].astype(jnp.float32)

    return dict(embed=params['embed'], wx_t=wx_t, m=m_p, whh_t=whh_t,
                wlin_t=wlin_t, bias=bias, lw=lw)


# ------------------------------------------------------------------
# Forward pass (glue in JAX, hot paths in Pallas)
# ------------------------------------------------------------------
def slot_neural_softmax_forward(packed, input_ids, labels, lengths, re_tags):
    embed = packed['embed']
    D = embed.shape[1]
    D_pad, H_pad = packed['wx_t'].shape
    C_pad = packed['lw'].shape[1]
    B, L = input_ids.shape
    C = re_tags.shape[-1]
    B_pad = _round_up(B, 8)

    TN = L * B_pad
    TILE_N = min(512, TN)
    TN_pad = _round_up(TN, TILE_N)

    # ---- time-major, batch/lane-padded inputs (glue; embedding gather in XLA) ----
    x_tm = embed[jnp.transpose(input_ids)]                           # (L, B, D)
    x_tm = jnp.pad(x_tm, ((0, 0), (0, B_pad - B), (0, D_pad - D)))
    rt_tm = jnp.pad(jnp.transpose(re_tags, (1, 0, 2)).astype(jnp.float32),
                    ((0, 0), (0, B_pad - B), (0, C_pad - C)))        # (L, B_pad, C_pad)

    x2d = jnp.pad(x_tm.reshape(TN, D_pad), ((0, TN_pad - TN), (0, 0)))
    rt2d = jnp.pad(rt_tm.reshape(TN, C_pad), ((0, TN_pad - TN), (0, 0)))

    # ---- Kernel A: fused marry-up + input projection (token-parallel grid) ----
    xproj2d = pl.pallas_call(
        marryup_proj_kernel,
        out_shape=jax.ShapeDtypeStruct((TN_pad, H_pad), jnp.float32),
        grid=(TN_pad // TILE_N,),
        in_specs=[pl.BlockSpec((TILE_N, D_pad), lambda i: (i, 0)),
                  pl.BlockSpec((TILE_N, C_pad), lambda i: (i, 0)),
                  pl.BlockSpec((D_pad, H_pad), lambda i: (0, 0)),
                  pl.BlockSpec((C_pad, H_pad), lambda i: (0, 0))],
        out_specs=pl.BlockSpec((TILE_N, H_pad), lambda i: (i, 0)),
        compiler_params=pltpu.CompilerParams(
            dimension_semantics=("parallel",),
            vmem_limit_bytes=VMEM_LIMIT),
    )(x2d, rt2d, packed['wx_t'], packed['m'])

    xproj = xproj2d[:TN].reshape(L, B_pad, H_pad)

    # labels with -1 at padded / out-of-length positions  -> (L, B_pad, 1) int32
    # NOTE: pack_padded_sequence is replaced by this masking; for a forward
    # unidirectional RNN with h0=0 the valid outputs are identical.
    valid = jnp.arange(L)[:, None] < lengths[None, :]                # (L, B)
    lbl_tm = jnp.where(valid, jnp.transpose(labels).astype(jnp.int32), -1)
    lbl_tm = jnp.pad(lbl_tm, ((0, 0), (0, B_pad - B)), constant_values=-1)[..., None]

    # ---- Kernel B: recurrence + head + CE + argmax, grid over time ----
    pred_tm, nll_sum = pl.pallas_call(
        rnn_head_kernel,
        out_shape=(jax.ShapeDtypeStruct((L, B_pad, 1), jnp.int32),
                   jax.ShapeDtypeStruct((1, 1), jnp.float32)),
        grid=(L,),
        in_specs=[pl.BlockSpec((1, B_pad, H_pad), lambda t: (t, 0, 0)),
                  pl.BlockSpec((1, B_pad, C_pad), lambda t: (t, 0, 0)),
                  pl.BlockSpec((1, B_pad, 1), lambda t: (t, 0, 0)),
                  pl.BlockSpec((H_pad, H_pad), lambda t: (0, 0)),
                  pl.BlockSpec((H_pad, C_pad), lambda t: (0, 0)),
                  pl.BlockSpec((1, C_pad), lambda t: (0, 0)),
                  pl.BlockSpec((1, C_pad), lambda t: (0, 0))],
        out_specs=(pl.BlockSpec((1, B_pad, 1), lambda t: (t, 0, 0)),
                   pl.BlockSpec((1, 1), lambda t: (0, 0))),
        scratch_shapes=[pltpu.VMEM((B_pad, H_pad), jnp.float32),
                        pltpu.VMEM((B_pad, 1), jnp.float32)],
        compiler_params=pltpu.CompilerParams(
            dimension_semantics=("arbitrary",),
            vmem_limit_bytes=VMEM_LIMIT),
    )(xproj, rt_tm, lbl_tm, packed['whh_t'], packed['wlin_t'],
      packed['bias'], packed['lw'])

    n_valid = jnp.maximum(jnp.sum(lengths).astype(jnp.float32), 1.0)
    loss = nll_sum[0, 0] / n_valid                                   # CE(mean)

    pred_bl = jnp.transpose(pred_tm[:, :B, 0])                       # (B, L)
    mask_bl = jnp.transpose(valid)                                   # (B, L)
    return loss, pred_bl.reshape(B * L), labels.reshape(B * L), mask_bl.reshape(B * L)


# ------------------------------------------------------------------
# Pure-JAX reference for validation
# ------------------------------------------------------------------
def reference_forward(params, input_ids, labels, lengths, re_tags):
    x = params['embed'][input_ids]
    denom = jnp.maximum(re_tags.sum(-1, keepdims=True), EPS)
    tag_in = jnp.einsum('blc,cd->bld', re_tags, params['re_tag_embed']) / denom
    x = jnp.concatenate([x, tag_in], axis=2)
    B, L, _ = x.shape
    H = params['w_hh'].shape[0]

    def step(h, x_t):
        h_new = jnp.tanh(x_t @ params['w_ih'].T + h @ params['w_hh'].T)
        return h_new, h_new

    _, hs = lax.scan(step, jnp.zeros((B, H), jnp.float32), jnp.transpose(x, (1, 0, 2)))
    h_seq = jnp.transpose(hs, (1, 0, 2))
    scores = h_seq @ params['w_lin'].T + params['b_lin']
    scores = scores + re_tags * params['logits_weights']
    logp = jax.nn.log_softmax(scores, axis=-1)
    nll = -jnp.take_along_axis(logp, labels[..., None], axis=-1)[..., 0]
    mask = jnp.arange(L)[None, :] < lengths[:, None]
    loss = (nll * mask).sum() / mask.sum()
    pred = jnp.argmax(scores, axis=-1)
    return loss, pred, mask


if __name__ == "__main__":
    key = jax.random.PRNGKey(0)
    B, L, V, D, Td, C, H = 2, 8, 32, 16, 8, 4, 16

    kp, ki, kl, kr = jax.random.split(key, 4)
    params = init_params(kp, V, D, Td, C, H)
    input_ids = jax.random.randint(ki, (B, L), 0, V)
    labels = jax.random.randint(kl, (B, L), 0, C)
    re_tags = (jax.random.uniform(kr, (B, L, C)) > 0.6).astype(jnp.float32)
    lengths = jnp.array([8, 6], dtype=jnp.int32)

    packed = prepare_weights(params)            # one-time packing (no per-call .T)
    fwd = jax.jit(slot_neural_softmax_forward)
    loss, pred_flat, true_flat, mask = fwd(packed, input_ids, labels, lengths, re_tags)
    jax.block_until_ready((loss, pred_flat, true_flat, mask))

    # flatten(): keep only valid positions, batch-major order (done outside jit)
    mask_np = np.asarray(mask)
    pred_labels = np.asarray(pred_flat)[mask_np]
    flattened_true_label = np.asarray(true_flat)[mask_np]

    # correctness check vs pure-JAX reference
    ref_loss, ref_pred, _ = reference_forward(params, input_ids, labels, lengths, re_tags)
    ref_pred_flat = np.asarray(ref_pred.reshape(-1))[mask_np]
    assert np.allclose(float(loss), float(ref_loss), atol=2e-3), (float(loss), float(ref_loss))
    assert np.array_equal(pred_labels, ref_pred_flat)
    assert pred_labels.shape == flattened_true_label.shape

    # TODO(synk): CRF neg-log-likelihood / Viterbi branch, KD/PR marry-up losses and
    # MultiMarginLoss are not exercised by this configuration and are not implemented.
    print("KERNEL_OK")
</pallas_src>

<mosaic_0001>
module attributes {stable_mosaic.version = 11 : i64} {
  func.func @marryup_proj_kernel(%arg0: i32, %arg1: memref<64x128xf32, #tpu.memory_space<vmem>>, %arg2: memref<64x128xf32, #tpu.memory_space<vmem>>, %arg3: memref<128x128xf32, #tpu.memory_space<vmem>>, %arg4: memref<128x128xf32, #tpu.memory_space<vmem>>, %arg5: memref<64x128xf32, #tpu.memory_space<vmem>>) attributes {dimension_semantics = [#tpu.dimension_semantics<parallel>], iteration_bounds = array<i64: 1>, scalar_prefetch = 0 : i64, scratch_operands = 0 : i64, tpu.core_type = #tpu.core_type<tc>, window_params = [{transform_indices = @transform_0, window_bounds = array<i64: 64, 128>}, {transform_indices = @transform_1, window_bounds = array<i64: 64, 128>}, {pipeline_mode = #tpu.pipeline_mode<synchronous>, transform_indices = @transform_2, window_bounds = array<i64: 128, 128>}, {pipeline_mode = #tpu.pipeline_mode<synchronous>, transform_indices = @transform_3, window_bounds = array<i64: 128, 128>}, {transform_indices = @transform_4, window_bounds = array<i64: 64, 128>}]} {
    %c0 = arith.constant 0 : index
    %c0_0 = arith.constant 0 : index
    %0 = vector.load %arg2[%c0, %c0_0] : memref<64x128xf32, #tpu.memory_space<vmem>>, vector<64x128xf32>
    %cst = arith.constant dense<0.000000e+00> : vector<64xf32>
    %1 = vector.multi_reduction <add>, %0, %cst [1] : vector<64x128xf32> to vector<64xf32>
    %2 = vector.shape_cast %1 : vector<64xf32> to vector<64x1xf32>
    %cst_1 = arith.constant 9.99999974E-6 : f32
    %3 = vector.broadcast %cst_1 : f32 to vector<64x1xf32>
    %4 = arith.maximumf %2, %3 : vector<64x1xf32>
    %5 = tpu.reciprocal %4 : vector<64x1xf32> -> vector<64x1xf32>
    %c0_2 = arith.constant 0 : index
    %c0_3 = arith.constant 0 : index
    %6 = vector.load %arg1[%c0_2, %c0_3] : memref<64x128xf32, #tpu.memory_space<vmem>>, vector<64x128xf32>
    %c0_4 = arith.constant 0 : index
    %c0_5 = arith.constant 0 : index
    %7 = vector.load %arg3[%c0_4, %c0_5] : memref<128x128xf32, #tpu.memory_space<vmem>>, vector<128x128xf32>
    %cst_6 = arith.constant dense<0.000000e+00> : vector<64x128xf32>
    %8 = tpu.matmul %6, %7, %cst_6 {dimension_numbers = #tpu.dot_dimension_numbers<[1], [0], [0], [1], [0, 0, 1, 1], [], []>} : vector<64x128xf32>, vector<128x128xf32>, vector<64x128xf32> -> vector<64x128xf32>
    %c0_7 = arith.constant 0 : index
    %c0_8 = arith.constant 0 : index
    %9 = vector.load %arg4[%c0_7, %c0_8] : memref<128x128xf32, #tpu.memory_space<vmem>>, vector<128x128xf32>
    %cst_9 = arith.constant dense<0.000000e+00> : vector<64x128xf32>
    %10 = tpu.matmul %0, %9, %cst_9 {dimension_numbers = #tpu.dot_dimension_numbers<[1], [0], [0], [1], [0, 0, 1, 1], [], []>} : vector<64x128xf32>, vector<128x128xf32>, vector<64x128xf32> -> vector<64x128xf32>
    %11 = vector.broadcast %5 : vector<64x1xf32> to vector<64x128xf32>
    %12 = arith.mulf %11, %10 : vector<64x128xf32>
    %13 = arith.addf %8, %12 : vector<64x128xf32>
    %c0_10 = arith.constant 0 : index
    %c0_11 = arith.constant 0 : index
    %14 = vector.load %arg5[%c0_10, %c0_11] : memref<64x128xf32, #tpu.memory_space<vmem>>, vector<64x128xf32>
    tpu.vector_store %arg5[%c0_10, %c0_11], %13 {strides = array<i32>} : memref<64x128xf32, #tpu.memory_space<vmem>>, vector<64x128xf32>,
    return
  }
  func.func @transform_0(%arg0: i32) -> (i32, i32) {
    %c0_i32 = arith.constant 0 : i32
    %c0_i32_0 = arith.constant 0 : i32
    return %arg0, %c0_i32 : i32, i32
  }
  func.func @transform_1(%arg0: i32) -> (i32, i32) {
    %c0_i32 = arith.constant 0 : i32
    %c0_i32_0 = arith.constant 0 : i32
    return %arg0, %c0_i32 : i32, i32
  }
  func.func @transform_2(%arg0: i32) -> (i32, i32) {
    %c0_i32 = arith.constant 0 : i32
    %c0_i32_0 = arith.constant 0 : i32
    %c0_i32_1 = arith.constant 0 : i32
    return %c0_i32, %c0_i32_0 : i32, i32
  }
  func.func @transform_3(%arg0: i32) -> (i32, i32) {
    %c0_i32 = arith.constant 0 : i32
    %c0_i32_0 = arith.constant 0 : i32
    %c0_i32_1 = arith.constant 0 : i32
    return %c0_i32, %c0_i32_0 : i32, i32
  }
  func.func @transform_4(%arg0: i32) -> (i32, i32) {
    %c0_i32 = arith.constant 0 : i32
    %c0_i32_0 = arith.constant 0 : i32
    return %arg0, %c0_i32 : i32, i32
  }
}

module attributes {stable_mosaic.version = 11 : i64} {
  func.func @rnn_head_kernel(%arg0: i32, %arg1: memref<1x8x128xf32, #tpu.memory_space<vmem>>, %arg2: memref<1x8x128xf32, #tpu.memory_space<vmem>>, %arg3: memref<1x8x1xi32, #tpu.memory_space<vmem>>, %arg4: memref<128x128xf32, #tpu.memory_space<vmem>>, %arg5: memref<128x128xf32, #tpu.memory_space<vmem>>, %arg6: memref<1x128xf32, #tpu.memory_space<vmem>>, %arg7: memref<1x128xf32, #tpu.memory_space<vmem>>, %arg8: memref<1x8x1xi32, #tpu.memory_space<vmem>>, %arg9: memref<1x1xf32, #tpu.memory_space<vmem>>, %arg10: memref<8x128xf32, #tpu.memory_space<vmem>>, %arg11: memref<8x1xf32, #tpu.memory_space<vmem>>) attributes {dimension_semantics = [#tpu.dimension_semantics<arbitrary>], iteration_bounds = array<i64: 8>, scalar_prefetch = 0 : i64, scratch_operands = 2 : i64, tpu.core_type = #tpu.core_type<tc>, window_params = [{transform_indices = @transform_0, window_bounds = array<i64: 1, 8, 128>}, {transform_indices = @transform_1, window_bounds = array<i64: 1, 8, 128>}, {transform_indices = @transform_2, window_bounds = array<i64: 1, 8, 1>}, {pipeline_mode = #tpu.pipeline_mode<synchronous>, transform_indices = @transform_3, window_bounds = array<i64: 128, 128>}, {pipeline_mode = #tpu.pipeline_mode<synchronous>, transform_indices = @transform_4, window_bounds = array<i64: 128, 128>}, {pipeline_mode = #tpu.pipeline_mode<synchronous>, transform_indices = @transform_5, window_bounds = array<i64: 1, 128>}, {pipeline_mode = #tpu.pipeline_mode<synchronous>, transform_indices = @transform_6, window_bounds = array<i64: 1, 128>}, {transform_indices = @transform_7, window_bounds = array<i64: 1, 8, 1>}, {pipeline_mode = #tpu.pipeline_mode<synchronous>, transform_indices = @transform_8, window_bounds = array<i64: 1, 1>}]} {
    %c0_i32 = arith.constant 0 : i32
    %0 = arith.cmpi eq, %arg0, %c0_i32 : i32
    %1 = arith.extui %0 : i1 to i32
    %c0_i32_0 = arith.constant 0 : i32
    %2 = arith.cmpi ne, %1, %c0_i32_0 : i32
    scf.if %2 {
      %cst_35 = arith.constant 0.000000e+00 : f32
      %62 = vector.broadcast %cst_35 : f32 to vector<8x128xf32>
      %c0_36 = arith.constant 0 : index
      %c0_37 = arith.constant 0 : index
      %63 = vector.load %arg10[%c0_36, %c0_37] : memref<8x128xf32, #tpu.memory_space<vmem>>, vector<8x128xf32>
      tpu.vector_store %arg10[%c0_36, %c0_37], %62 {strides = array<i32>} : memref<8x128xf32, #tpu.memory_space<vmem>>, vector<8x128xf32>,
      %cst_38 = arith.constant 0.000000e+00 : f32
      %64 = vector.broadcast %cst_38 : f32 to vector<8x1xf32>
      %c0_39 = arith.constant 0 : index
      %c0_40 = arith.constant 0 : index
      %65 = vector.load %arg11[%c0_39, %c0_40] : memref<8x1xf32, #tpu.memory_space<vmem>>, vector<8x1xf32>
      tpu.vector_store %arg11[%c0_39, %c0_40], %64 {strides = array<i32>} : memref<8x1xf32, #tpu.memory_space<vmem>>, vector<8x1xf32>,
    } else {
    }
    %c0 = arith.constant 0 : index
    %c0_1 = arith.constant 0 : index
    %c0_2 = arith.constant 0 : index
    %3 = vector.load %arg1[%c0, %c0_1, %c0_2] : memref<1x8x128xf32, #tpu.memory_space<vmem>>, vector<1x8x128xf32>
    %4 = vector.shape_cast %3 : vector<1x8x128xf32> to vector<8x128xf32>
    %c0_3 = arith.constant 0 : index
    %c0_4 = arith.constant 0 : index
    %5 = vector.load %arg10[%c0_3, %c0_4] : memref<8x128xf32, #tpu.memory_space<vmem>>, vector<8x128xf32>
    %c0_5 = arith.constant 0 : index
    %c0_6 = arith.constant 0 : index
    %6 = vector.load %arg4[%c0_5, %c0_6] : memref<128x128xf32, #tpu.memory_space<vmem>>, vector<128x128xf32>
    %cst = arith.constant dense<0.000000e+00> : vector<8x128xf32>
    %7 = tpu.matmul %5, %6, %cst {dimension_numbers = #tpu.dot_dimension_numbers<[1], [0], [0], [1], [0, 0, 1, 1], [], []>} : vector<8x128xf32>, vector<128x128xf32>, vector<8x128xf32> -> vector<8x128xf32>
    %8 = arith.addf %4, %7 : vector<8x128xf32>
    %9 = math.tanh %8 : vector<8x128xf32>
    %c0_7 = arith.constant 0 : index
    %c0_8 = arith.constant 0 : index
    %10 = vector.load %arg10[%c0_7, %c0_8] : memref<8x128xf32, #tpu.memory_space<vmem>>, vector<8x128xf32>
    tpu.vector_store %arg10[%c0_7, %c0_8], %9 {strides = array<i32>} : memref<8x128xf32, #tpu.memory_space<vmem>>, vector<8x128xf32>,
    %c0_9 = arith.constant 0 : index
    %c0_10 = arith.constant 0 : index
    %11 = vector.load %arg5[%c0_9, %c0_10] : memref<128x128xf32, #tpu.memory_space<vmem>>, vector<128x128xf32>
    %cst_11 = arith.constant dense<0.000000e+00> : vector<8x128xf32>
    %12 = tpu.matmul %9, %11, %cst_11 {dimension_numbers = #tpu.dot_dimension_numbers<[1], [0], [0], [1], [0, 0, 1, 1], [], []>} : vector<8x128xf32>, vector<128x128xf32>, vector<8x128xf32> -> vector<8x128xf32>
    %c0_12 = arith.constant 0 : index
    %c0_13 = arith.constant 0 : index
    %13 = vector.load %arg6[%c0_12, %c0_13] : memref<1x128xf32, #tpu.memory_space<vmem>>, vector<1x128xf32>
    %14 = vector.broadcast %13 : vector<1x128xf32> to vector<8x128xf32>
    %15 = arith.addf %12, %14 : vector<8x128xf32>
    %c0_14 = arith.constant 0 : index
    %c0_15 = arith.constant 0 : index
    %c0_16 = arith.constant 0 : index
    %16 = vector.load %arg2[%c0_14, %c0_15, %c0_16] : memref<1x8x128xf32, #tpu.memory_space<vmem>>, vector<1x8x128xf32>
    %17 = vector.shape_cast %16 : vector<1x8x128xf32> to vector<8x128xf32>
    %c0_17 = arith.constant 0 : index
    %c0_18 = arith.constant 0 : index
    %18 = vector.load %arg7[%c0_17, %c0_18] : memref<1x128xf32, #tpu.memory_space<vmem>>, vector<1x128xf32>
    %19 = vector.broadcast %18 : vector<1x128xf32> to vector<8x128xf32>
    %20 = arith.mulf %17, %19 : vector<8x128xf32>
    %21 = arith.addf %15, %20 : vector<8x128xf32>
    %cst_19 = arith.constant dense<0xFF800000> : vector<8xf32>
    %22 = vector.multi_reduction <maximumf>, %21, %cst_19 [1] : vector<8x128xf32> to vector<8xf32>
    %23 = vector.shape_cast %22 : vector<8xf32> to vector<8x1xf32>
    %24 = vector.broadcast %23 : vector<8x1xf32> to vector<8x128xf32>
    %25 = arith.subf %21, %24 : vector<8x128xf32>
    %26 = math.exp %25 : vector<8x128xf32>
    %cst_20 = arith.constant dense<0.000000e+00> : vector<8xf32>
    %27 = vector.multi_reduction <add>, %26, %cst_20 [1] : vector<8x128xf32> to vector<8xf32>
    %28 = vector.shape_cast %27 : vector<8xf32> to vector<8x1xf32>
    %29 = math.log %28 : vector<8x1xf32>
    %30 = arith.addf %23, %29 : vector<8x1xf32>
    %31 = tpu.iota {dimensions = array<i32: 1>} : vector<8x128xi32>
    %c0_21 = arith.constant 0 : index
    %c0_22 = arith.constant 0 : index
    %c0_23 = arith.constant 0 : index
    %32 = vector.load %arg3[%c0_21, %c0_22, %c0_23] : memref<1x8x1xi32, #tpu.memory_space<vmem>>, vector<1x8x1xi32>
    %33 = vector.shape_cast %32 : vector<1x8x1xi32> to vector<8x1xi32>
    %34 = vector.broadcast %33 : vector<8x1xi32> to vector<8x128xi32>
    %35 = arith.cmpi eq, %31, %34 : vector<8x128xi32>
    %36 = arith.extui %35 : vector<8x128xi1> to vector<8x128xi32>
    %37 = arith.sitofp %36 : vector<8x128xi32> to vector<8x128xf32>
    %38 = arith.mulf %21, %37 : vector<8x128xf32>
    %cst_24 = arith.constant dense<0.000000e+00> : vector<8xf32>
    %39 = vector.multi_reduction <add>, %38, %cst_24 [1] : vector<8x128xf32> to vector<8xf32>
    %40 = vector.shape_cast %39 : vector<8xf32> to vector<8x1xf32>
    %41 = arith.subf %30, %40 : vector<8x1xf32>
    %c0_i32_25 = arith.constant 0 : i32
    %42 = vector.broadcast %c0_i32_25 : i32 to vector<8x1xi32>
    %43 = arith.cmpi sge, %33, %42 : vector<8x1xi32>
    %44 = arith.extui %43 : vector<8x1xi1> to vector<8x1xi32>
    %45 = arith.sitofp %44 : vector<8x1xi32> to vector<8x1xf32>
    %c0_26 = arith.constant 0 : index
    %c0_27 = arith.constant 0 : index
    %46 = vector.load %arg11[%c0_26, %c0_27] : memref<8x1xf32, #tpu.memory_space<vmem>>, vector<8x1xf32>
    %47 = arith.mulf %41, %45 : vector<8x1xf32>
    %48 = arith.addf %46, %47 : vector<8x1xf32>
    %c0_28 = arith.constant 0 : index
    %c0_29 = arith.constant 0 : index
    %49 = vector.load %arg11[%c0_28, %c0_29] : memref<8x1xf32, #tpu.memory_space<vmem>>, vector<8x1xf32>
    tpu.vector_store %arg11[%c0_28, %c0_29], %48 {strides = array<i32>} : memref<8x1xf32, #tpu.memory_space<vmem>>, vector<8x1xf32>,
    %50 = vector.broadcast %23 : vector<8x1xf32> to vector<8x128xf32>
    %51 = arith.cmpf oeq, %21, %50 : vector<8x128xf32>
    %c128_i32 = arith.constant 128 : i32
    %52 = vector.broadcast %c128_i32 : i32 to vector<8x128xi32>
    %53 = arith.select %51, %31, %52 : vector<8x128xi1>, vector<8x128xi32>
    %cst_30 = arith.constant dense<2147483647> : vector<8xi32>
    %54 = vector.multi_reduction <minsi>, %53, %cst_30 [1] : vector<8x128xi32> to vector<8xi32>
    %55 = vector.shape_cast %54 : vector<8xi32> to vector<8x1xi32>
    %c0_31 = arith.constant 0 : index
    %c0_32 = arith.constant 0 : index
    %c0_33 = arith.constant 0 : index
    %56 = vector.load %arg8[%c0_31, %c0_32, %c0_33] : memref<1x8x1xi32, #tpu.memory_space<vmem>>, vector<1x8x1xi32>
    %57 = vector.shape_cast %56 : vector<1x8x1xi32> to vector<8x1xi32>
    %58 = vector.shape_cast %55 : vector<8x1xi32> to vector<1x8x1xi32>
    tpu.vector_store %arg8[%c0_31, %c0_32, %c0_33], %58 {strides = array<i32>} : memref<1x8x1xi32, #tpu.memory_space<vmem>>, vector<1x8x1xi32>,
    %c7_i32 = arith.constant 7 : i32
    %59 = arith.cmpi eq, %arg0, %c7_i32 : i32
    %60 = arith.extui %59 : i1 to i32
    %c0_i32_34 = arith.constant 0 : i32
    %61 = arith.cmpi ne, %60, %c0_i32_34 : i32
    scf.if %61 {
      %c0_35 = arith.constant 0 : index
      %c0_36 = arith.constant 0 : index
      %62 = vector.load %arg11[%c0_35, %c0_36] : memref<8x1xf32, #tpu.memory_space<vmem>>, vector<8x1xf32>
      %cst_37 = arith.constant dense<0.000000e+00> : vector<1xf32>
      %63 = vector.multi_reduction <add>, %62, %cst_37 [0] : vector<8x1xf32> to vector<1xf32>
      %64 = vector.shape_cast %63 : vector<1xf32> to vector<1x1xf32>
      %c0_38 = arith.constant 0 : index
      %c0_39 = arith.constant 0 : index
      %65 = vector.load %arg9[%c0_38, %c0_39] : memref<1x1xf32, #tpu.memory_space<vmem>>, vector<1x1xf32>
      tpu.vector_store %arg9[%c0_38, %c0_39], %64 {strides = array<i32>} : memref<1x1xf32, #tpu.memory_space<vmem>>, vector<1x1xf32>,
    } else {
    }
    return
  }
  func.func @transform_0(%arg0: i32) -> (i32, i32, i32) {
    %c0_i32 = arith.constant 0 : i32
    %c0_i32_0 = arith.constant 0 : i32
    %c0_i32_1 = arith.constant 0 : i32
    return %arg0, %c0_i32, %c0_i32_0 : i32, i32, i32
  }
  func.func @transform_1(%arg0: i32) -> (i32, i32, i32) {
    %c0_i32 = arith.constant 0 : i32
    %c0_i32_0 = arith.constant 0 : i32
    %c0_i32_1 = arith.constant 0 : i32
    return %arg0, %c0_i32, %c0_i32_0 : i32, i32, i32
  }
  func.func @transform_2(%arg0: i32) -> (i32, i32, i32) {
    %c0_i32 = arith.constant 0 : i32
    %c0_i32_0 = arith.constant 0 : i32
    %c0_i32_1 = arith.constant 0 : i32
    return %arg0, %c0_i32, %c0_i32_0 : i32, i32, i32
  }
  func.func @transform_3(%arg0: i32) -> (i32, i32) {
    %c0_i32 = arith.constant 0 : i32
    %c0_i32_0 = arith.constant 0 : i32
    %c0_i32_1 = arith.constant 0 : i32
    return %c0_i32, %c0_i32_0 : i32, i32
  }
  func.func @transform_4(%arg0: i32) -> (i32, i32) {
    %c0_i32 = arith.constant 0 : i32
    %c0_i32_0 = arith.constant 0 : i32
    %c0_i32_1 = arith.constant 0 : i32
    return %c0_i32, %c0_i32_0 : i32, i32
  }
  func.func @transform_5(%arg0: i32) -> (i32, i32) {
    %c0_i32 = arith.constant 0 : i32
    %c0_i32_0 = arith.constant 0 : i32
    %c0_i32_1 = arith.constant 0 : i32
    return %c0_i32, %c0_i32_0 : i32, i32
  }
  func.func @transform_6(%arg0: i32) -> (i32, i32) {
    %c0_i32 = arith.constant 0 : i32
    %c0_i32_0 = arith.constant 0 : i32
    %c0_i32_1 = arith.constant 0 : i32
    return %c0_i32, %c0_i32_0 : i32, i32
  }
  func.func @transform_7(%arg0: i32) -> (i32, i32, i32) {
    %c0_i32 = arith.constant 0 : i32
    %c0_i32_0 = arith.constant 0 : i32
    %c0_i32_1 = arith.constant 0 : i32
    return %arg0, %c0_i32, %c0_i32_0 : i32, i32, i32
  }
  func.func @transform_8(%arg0: i32) -> (i32, i32) {
    %c0_i32 = arith.constant 0 : i32
    %c0_i32_0 = arith.constant 0 : i32
    %c0_i32_1 = arith.constant 0 : i32
    return %c0_i32, %c0_i32_0 : i32, i32
  }
}

</mosaic_0001>

<bundles_post_ra>
// kernel: slot_neural_softmax_forward.2
= control target key start
LH: loop header
LB: loop body
LE: loop exit
PB: predicated region body
PF: predicated region fallthrough
CT: control target
= control target key end

     0   :  { %s672_s3 = inlined_call_operand.vmem [shape: f32[128,128], index: 3, kind: input, shape index: {}]   ;;  %s673_s2 = inlined_call_operand.vmem [shape: f32[128,128], index: 2, kind: input, shape index: {}]   ;;  %s674_s1 = inlined_call_operand.vmem [shape: f32[64,128], index: 1, kind: input, shape index: {}]   ;;  %s675_s0 = inlined_call_operand.vmem [shape: f32[64,128], index: 0, kind: input, shape index: {}]   ;;  %s676_s4 = inlined_call_operand.vmem [shape: f32[64,128], index: 4, kind: output, shape index: {}]  }
   0x1   :  { %v96_v0 = vld [vmem:[%s672_s3 + $0x78] sm:$0xff]  ;;  %v95_v2 = vld [vmem:[%s672_s3 + $0x70] sm:$0xff]  ;;  %v94_v4 = vld [vmem:[%s672_s3 + $0x68] sm:$0xff] }
   0x2   :  { %v80_v1 = vld [vmem:[%s673_s2 + $0x78] sm:$0xff]  ;;  %375 = vmatprep.subr.mxu0 %v96_v0  ;;  %v79_v3 = vld [vmem:[%s673_s2 + $0x70] sm:$0xff]  ;;  %v78_v5 = vld [vmem:[%s673_s2 + $0x68] sm:$0xff] }
   0x3   :  { %419 = vmatprep.subr.mxu1 %v80_v1  ;;  %376 = vmatpush3.msra.mxu0 %v96_v0  ;;  %v93_v6 = vld [vmem:[%s672_s3 + $0x60] sm:$0xff]  ;;  %v92_v8 = vld [vmem:[%s672_s3 + $0x58] sm:$0xff]  ;;  %v91_v10 = vld [vmem:[%s672_s3 + $0x50] sm:$0xff] }
   0x4   :  { %420 = vmatpush3.msra.mxu1 %v80_v1  ;;  %377 = vmatprep.subr.mxu0 %v95_v2  ;;  %v77_v7 = vld [vmem:[%s673_s2 + $0x60] sm:$0xff]  ;;  %v76_v9 = vld [vmem:[%s673_s2 + $0x58] sm:$0xff]  ;;  %v75_v11 = vld [vmem:[%s673_s2 + $0x50] sm:$0xff] }
   0x5   :  { %421 = vmatprep.subr.mxu1 %v79_v3  ;;  %378 = vmatpush3.msra.mxu0 %v95_v2  ;;  %v90_v12 = vld [vmem:[%s672_s3 + $0x48] sm:$0xff]  ;;  %v89_v14 = vld [vmem:[%s672_s3 + $0x40] sm:$0xff]  ;;  %v88_v16 = vld [vmem:[%s672_s3 + $0x38] sm:$0xff] }
   0x6   :  { %422 = vmatpush3.msra.mxu1 %v79_v3  ;;  %379 = vmatprep.subr.mxu0 %v94_v4  ;;  %v74_v13 = vld [vmem:[%s673_s2 + $0x48] sm:$0xff]  ;;  %v73_v15 = vld [vmem:[%s673_s2 + $0x40] sm:$0xff]  ;;  %v72_v17 = vld [vmem:[%s673_s2 + $0x38] sm:$0xff] }
   0x7   :  { %423 = vmatprep.subr.mxu1 %v78_v5  ;;  %380 = vmatpush3.msra.mxu0 %v94_v4  ;;  %v87_v18 = vld [vmem:[%s672_s3 + $0x30] sm:$0xff]  ;;  %v86_v20 = vld [vmem:[%s672_s3 + $0x28] sm:$0xff]  ;;  %v85_v22 = vld [vmem:[%s672_s3 + $0x20] sm:$0xff] }
   0x8   :  { %424 = vmatpush3.msra.mxu1 %v78_v5  ;;  %381 = vmatprep.subr.mxu0 %v93_v6  ;;  %v71_v19 = vld [vmem:[%s673_s2 + $0x30] sm:$0xff]  ;;  %v70_v21 = vld [vmem:[%s673_s2 + $0x28] sm:$0xff]  ;;  %v69_v23 = vld [vmem:[%s673_s2 + $0x20] sm:$0xff] }
   0x9   :  { %425 = vmatprep.subr.mxu1 %v77_v7  ;;  %382 = vmatpush3.msra.mxu0 %v93_v6  ;;  %v84_v24 = vld [vmem:[%s672_s3 + $0x18] sm:$0xff]  ;;  %v83_v26 = vld [vmem:[%s672_s3 + $0x10] sm:$0xff]  ;;  %v82_v28 = vld [vmem:[%s672_s3 + $0x8] sm:$0xff] }
   0xa   :  { %426 = vmatpush3.msra.mxu1 %v77_v7  ;;  %383 = vmatprep.subr.mxu0 %v92_v8  ;;  %v68_v25 = vld [vmem:[%s673_s2 + $0x18] sm:$0xff]  ;;  %v67_v27 = vld [vmem:[%s673_s2 + $0x10] sm:$0xff]  ;;  %v66_v29 = vld [vmem:[%s673_s2 + $0x8] sm:$0xff] }
   0xb   :  { %427 = vmatprep.subr.mxu1 %v76_v9  ;;  %384 = vmatpush3.msra.mxu0 %v92_v8  ;;  %v81_v30 = vld [vmem:[%s672_s3] sm:$0xff]  ;;  %v18_v34 = vld [vmem:[%s674_s1 + $0x8] sm:$0xff]  ;;  %v19_v36 = vld [vmem:[%s674_s1 + $0x10] sm:$0xff] }
   0xc   :  { %428 = vmatpush3.msra.mxu1 %v76_v9  ;;  %385 = vmatprep.subr.mxu0 %v91_v10  ;;  %v65_v31 = vld [vmem:[%s673_s2] sm:$0xff]  ;;  %v58_v35 = vld [vmem:[%s675_s0 + $0x8] sm:$0xff]  ;;  %v59_v37 = vld [vmem:[%s675_s0 + $0x10] sm:$0xff] }
   0xd   :  { %429 = vmatprep.subr.mxu1 %v75_v11  ;;  %386 = vmatpush3.msra.mxu0 %v91_v10  ;;  %v17_v32 = vld [vmem:[%s674_s1] sm:$0xff]  ;;  %v20_v38 = vld [vmem:[%s674_s1 + $0x18] sm:$0xff]  ;;  %v22_v42 = vld [vmem:[%s674_s1 + $0x28] sm:$0xff] }
   0xe   :  { %430 = vmatpush3.msra.mxu1 %v75_v11  ;;  %387 = vmatprep.subr.mxu0 %v90_v12  ;;  %v57_v33 = vld [vmem:[%s675_s0] sm:$0xff]  ;;  %v60_v39 = vld [vmem:[%s675_s0 + $0x18] sm:$0xff]  ;;  %v62_v43 = vld [vmem:[%s675_s0 + $0x28] sm:$0xff] }
   0xf   :  { %431 = vmatprep.subr.mxu1 %v74_v13  ;;  %388 = vmatpush3.msra.mxu0 %v90_v12  ;;  %v21_v40 = vld [vmem:[%s674_s1 + $0x20] sm:$0xff]  ;;  %v23_v44 = vld [vmem:[%s674_s1 + $0x30] sm:$0xff]  ;;  %v24_v46 = vld [vmem:[%s674_s1 + $0x38] sm:$0xff] }
  0x10   :  { %432 = vmatpush3.msra.mxu1 %v74_v13  ;;  %389 = vmatprep.subr.mxu0 %v89_v14  ;;  %v61_v41 = vld [vmem:[%s675_s0 + $0x20] sm:$0xff]  ;;  %v63_v45 = vld [vmem:[%s675_s0 + $0x30] sm:$0xff]  ;;  %v64_v47 = vld [vmem:[%s675_s0 + $0x38] sm:$0xff] }
  0x11   :  { %433 = vmatprep.subr.mxu1 %v73_v15  ;;  %390 = vmatpush3.msra.mxu0 %v89_v14 }
  0x12   :  { %434 = vmatpush3.msra.mxu1 %v73_v15  ;;  %391 = vmatprep.subr.mxu0 %v88_v16 }
  0x13   :  { %435 = vmatprep.subr.mxu1 %v72_v17  ;;  %392 = vmatpush3.msra.mxu0 %v88_v16 }
  0x14   :  { %436 = vmatpush3.msra.mxu1 %v72_v17  ;;  %393 = vmatprep.subr.mxu0 %v87_v18 }
  0x15   :  { %437 = vmatprep.subr.mxu1 %v71_v19  ;;  %394 = vmatpush3.msra.mxu0 %v87_v18 }
  0x16   :  { %438 = vmatpush3.msra.mxu1 %v71_v19  ;;  %395 = vmatprep.subr.mxu0 %v86_v20 }
  0x17   :  { %439 = vmatprep.subr.mxu1 %v70_v21  ;;  %396 = vmatpush3.msra.mxu0 %v86_v20 }
  0x18   :  { %440 = vmatpush3.msra.mxu1 %v70_v21  ;;  %397 = vmatprep.subr.mxu0 %v85_v22 }
  0x19   :  { %441 = vmatprep.subr.mxu1 %v69_v23  ;;  %398 = vmatpush3.msra.mxu0 %v85_v22 }
  0x1a   :  { %442 = vmatpush3.msra.mxu1 %v69_v23  ;;  %399 = vmatprep.subr.mxu0 %v84_v24 }
  0x1b   :  { %443 = vmatprep.subr.mxu1 %v68_v25  ;;  %400 = vmatpush3.msra.mxu0 %v84_v24 }
  0x1c   :  { %444 = vmatpush3.msra.mxu1 %v68_v25  ;;  %401 = vmatprep.subr.mxu0 %v83_v26 }
  0x1d   :  { %445 = vmatprep.subr.mxu1 %v67_v27  ;;  %402 = vmatpush3.msra.mxu0 %v83_v26 }
  0x1e   :  { %446 = vmatpush3.msra.mxu1 %v67_v27  ;;  %403 = vmatprep.subr.mxu0 %v82_v28 }
  0x1f   :  { %447 = vmatprep.subr.mxu1 %v66_v29  ;;  %404 = vmatpush3.msra.mxu0 %v82_v28 }
  0x20   :  { %448 = vmatpush3.msra.mxu1 %v66_v29  ;;  %405 = vmatprep.subr.mxu0 %v81_v30 }
  0x21   :  { %449 = vmatprep.subr.mxu1 %v65_v31  ;;  %406 = vmatpush3.msra.mxu0 %v81_v30 }
  0x22   :  { %407 = vmatprep.mubr.f32.mxu0 %v17_v32  ;;  %450 = vmatpush3.msra.mxu1 %v65_v31 }
  0x23   :  { %451 = vmatprep.mubr.f32.mxu1 %v57_v33  ;;  %408 = vmatmul.mubr.f32.vlgmr.msra.gmra.mxu0 %v18_v34 }
  0x24   :  { %452 = vmatmul.mubr.f32.vlgmr.msra.gmra.mxu1 %v58_v35  ;;  %410 = vmatprep.mubr.f32.mxu0 %v19_v36 }
  0x25   :  { %454 = vmatprep.mubr.f32.mxu1 %v59_v37  ;;  %25 = vadd.xlane.f32.xlu0 %v17_v32 }
  0x26   :  { %29 = vadd.xlane.f32.xlu1 %v19_v36 }
  0x27   :  { %411 = vmatmul.mubr.f32.gmra.mxu0 %v20_v38 }
  0x28   :  { %455 = vmatmul.mubr.f32.gmra.mxu1 %v60_v39  ;;  %413 = vmatprep.mubr.f32.mxu0 %v21_v40 }
  0x29   :  { %457 = vmatprep.mubr.f32.mxu1 %v61_v41  ;;  %27 = vadd.xlane.f32.xlu0 %v18_v34 }
  0x2a   :  { %31 = vadd.xlane.f32.xlu1 %v20_v38 }
  0x2b   :  { %414 = vmatmul.mubr.f32.gmra.mxu0 %v22_v42 }
  0x2c   :  { %458 = vmatmul.mubr.f32.gmra.mxu1 %v62_v43  ;;  %416 = vmatprep.mubr.f32.mxu0 %v23_v44 }
  0x2d   :  { %460 = vmatprep.mubr.f32.mxu1 %v63_v45  ;;  %33 = vadd.xlane.f32.xlu0 %v21_v40 }
  0x2e   :  { %35 = vadd.xlane.f32.xlu1 %v22_v42 }
  0x2f   :  { %417 = vmatmul.mubr.f32.gmra.mxu0 %v24_v46 }
  0x30   :  { %461 = vmatmul.mubr.f32.gmra.mxu1 %v64_v47 }
  0x31   :  { %37 = vadd.xlane.f32.xlu0 %v23_v44 }
  0x32   :  { %39 = vadd.xlane.f32.xlu1 %v24_v46 }
  0xae   :  { %v26_v48 = vpop.xlane.xlu0 %25 }
  0xaf   :  { %v30_v49 = vpop.xlane.xlu1 %29  ;;  %v41_v53 = vmax.f32 %v26_v48, 1e-05 }
  0xb0   :  { %v43_v57 = vmax.f32 %v30_v49, 1e-05 }
  0xb2   :  { %v28_v50 = vpop.xlane.xlu0 %27 }
  0xb3   :  { %v32_v51 = vpop.xlane.xlu1 %31  ;;  %v42_v52 = vmax.f32 %v28_v50, 1e-05 }
  0xb4   :  { %v44_v55 = vmax.f32 %v32_v51, 1e-05 }
  0xb5   :  { %463 = vrcp.f32 %v42_v52 }
  0xb6   :  { %v34_v56 = vpop.xlane.xlu0 %33  ;;  %465 = vrcp.f32 %v41_v53 }
  0xb7   :  { %v36_v54 = vpop.xlane.xlu1 %35  ;;  %467 = vrcp.f32 %v44_v55  ;;  %v45_v60 = vmax.f32 %v34_v56, 1e-05 }
  0xb8   :  { %v46_v58 = vmax.f32 %v36_v54, 1e-05  ;;  %469 = vrcp.f32 %v43_v57 }
  0xba   :  { %v38_v61 = vpop.xlane.xlu0 %37  ;;  %471 = vrcp.f32 %v46_v58 }
  0xbb   :  { %v40_v59 = vpop.xlane.xlu1 %39  ;;  %473 = vrcp.f32 %v45_v60  ;;  %v47_v63 = vmax.f32 %v38_v61, 1e-05 }
  0xbc   :  { %v48_v62 = vmax.f32 %v40_v59, 1e-05 }
  0xbe   :  { %475 = vrcp.f32 %v48_v62 }
  0xbf   :  { %477 = vrcp.f32 %v47_v63 }
  0xc2   :  { %v464_v0 = vpop.eup %463 }
  0xc3   :  { %v466_v1 = vpop.eup %465 }
  0xc4   :  { %v468_v5 = vpop.eup %467 }
  0xc5   :  { %v470_v12 = vpop.eup %469 }
  0xc7   :  { %v472_v15 = vpop.eup %471 }
  0xc8   :  { %v474_v20 = vpop.eup %473 }
  0xcb   :  { %v476_v25 = vpop.eup %475 }
  0xcc   :  { %v478_v30 = vpop.eup %477 }
  0xe3   :  { %v409_v2 = vpop.f32.mrf.mxu0 }
  0xe4   :  { %v453_v3 = vpop.f32.mrf.mxu1  ;;  %v203_v4 = vmul.f32 %v464_v0, %v409_v2 }
  0xe5   :  { %v163_v6 = vpop.f32.mrf.mxu0 }
  0xe6   :  { %v276_v7 = vpop.f32.mrf.mxu1  ;;  %v282_v8 = vadd.f32 %v453_v3, %v203_v4  ;;  %v202_v9 = vmul.f32 %v466_v1, %v163_v6 }
  0xe7   :  { %v412_v10 = vpop.f32.mrf.mxu0 }
  0xe8   :  { %v456_v11 = vpop.f32.mrf.mxu1  ;;  %316 = vst [vmem:[%s676_s4 + $0x8] sm:$0xff] %v282_v8  ;;  %v277_v13 = vadd.f32 %v276_v7, %v202_v9  ;;  %v205_v14 = vmul.f32 %v468_v5, %v412_v10 }
  0xe9   :  { %v173_v16 = vpop.f32.mrf.mxu0 }
  0xea   :  { %v286_v17 = vpop.f32.mrf.mxu1  ;;  %315 = vst [vmem:[%s676_s4] sm:$0xff] %v277_v13  ;;  %v292_v18 = vadd.f32 %v456_v11, %v205_v14  ;;  %v204_v19 = vmul.f32 %v470_v12, %v173_v16 }
  0xeb   :  { %v415_v21 = vpop.f32.mrf.mxu0 }
  0xec   :  { %v459_v22 = vpop.f32.mrf.mxu1  ;;  %318 = vst [vmem:[%s676_s4 + $0x18] sm:$0xff] %v292_v18  ;;  %v287_v23 = vadd.f32 %v286_v17, %v204_v19  ;;  %v207_v24 = vmul.f32 %v472_v15, %v415_v21 }
  0xed   :  { %v183_v26 = vpop.f32.mrf.mxu0 }
  0xee   :  { %v296_v27 = vpop.f32.mrf.mxu1  ;;  %317 = vst [vmem:[%s676_s4 + $0x10] sm:$0xff] %v287_v23  ;;  %v302_v28 = vadd.f32 %v459_v22, %v207_v24  ;;  %v206_v29 = vmul.f32 %v474_v20, %v183_v26 }
  0xef   :  { %v418_v31 = vpop.f32.mrf.mxu0 }
  0xf0   :  { %v462_v32 = vpop.f32.mrf.mxu1  ;;  %320 = vst [vmem:[%s676_s4 + $0x28] sm:$0xff] %v302_v28  ;;  %v297_v33 = vadd.f32 %v296_v27, %v206_v29  ;;  %v209_v34 = vmul.f32 %v476_v25, %v418_v31 }
  0xf1   :  { %v193_v35 = vpop.f32.mrf.mxu0 }
  0xf2   :  { %319 = vst [vmem:[%s676_s4 + $0x20] sm:$0xff] %v297_v33  ;;  %v312_v36 = vadd.f32 %v462_v32, %v209_v34  ;;  %v208_v37 = vmul.f32 %v478_v30, %v193_v35  ;;  %v306_v38 = vpop.f32.mrf.mxu1 }
  0xf4   :  { %322 = vst [vmem:[%s676_s4 + $0x38] sm:$0xff] %v312_v36  ;;  %v307_v39 = vadd.f32 %v306_v38, %v208_v37 }
  0xf6   :  { %321 = vst [vmem:[%s676_s4 + $0x30] sm:$0xff] %v307_v39 }

// kernel: slot_neural_softmax_forward.3
= control target key start
LH: loop header
LB: loop body
LE: loop exit
PB: predicated region body
PF: predicated region fallthrough
CT: control target
= control target key end

     0   :  { %14 = vsyncpa [#allocation5], 0  ;;  %s934_s27 = smov 0   ;;  %s1139_s0 = inlined_call_operand.vmem [shape: f32[8,8,128], index: 0, kind: input, shape index: {}]   ;;  %s1140_s1 = inlined_call_operand.vmem [shape: f32[8,8,128], index: 1, kind: input, shape index: {}]   ;;  %s1141_s2 = inlined_call_operand.vmem [shape: s32[8,8,1], index: 2, kind: input, shape index: {}]   ;;  %s1142_s3 = inlined_call_operand.vmem [shape: f32[128,128], index: 3, kind: input, shape index: {}]   ;;  %s1143_s4 = inlined_call_operand.vmem [shape: f32[128,128], index: 4, kind: input, shape index: {}]   ;;  %s1144_s5 = inlined_call_operand.vmem [shape: f32[1,128], index: 5, kind: input, shape index: {}]   ;;  %s1145_s6 = inlined_call_operand.vmem [shape: f32[1,128], index: 6, kind: input, shape index: {}]   ;;  %s1146_s7 = inlined_call_operand.vmem [shape: s32[8,8,1], index: 7, kind: output, shape index: {0}]   ;;  %s1147_s8 = inlined_call_operand.hbm [shape: f32[1,1], index: 8, kind: output, shape index: {1}]  }
   0x1 LB: > { %s940_s28 = sadd.s32 4294967295, %s882_s27   ;;  %p702_p0 = scmp.ge.s32.totalorder %s882_s27, 1  ;;  %s882_s27 = sphi %s934_s27, %s20_s27  }
   0x2   : > { %p278_p1 = scmp.lt.s32.totalorder %s882_s27, 9 }
   0x4   : > { %p279_p2 = pnand %p702_p0, %p278_p1 }
   0x5   : > { %p318_p3 = scmp.lt.s32.totalorder (!%p279_p2), %s940_s28, 7  ;;  %p707_p4 = scmp.ne.s32.totalorder (!%p279_p2), %s940_s28, 0 }
   0x6   : > { %282 = sbr.rel (%p279_p2) target bundleno = 915 (0x393), region = 48 }
   0xb   : > { %s319_s29 = scalar_select %p318_p3, %s940_s28, 7 }
   0xc   : > { %337 = sbr.rel (%p707_p4) target bundleno = 19 (0x13), region = 52 }
   0xd   : > { %s946_s30 = sshll.u32 %s319_s29, 3 }
   0xe   : > { %s321_s11 = scalar_lea.vmem %s1139_s0, %s946_s30  ;;  %s325_s14 = scalar_lea.vmem %s1140_s1, %s946_s30 }
   0xf   : > { %s329_s17 = scalar_lea.vmem %s1141_s2, %s946_s30  ;;  %s333_s20 = scalar_lea.vmem %s1146_s7, %s946_s30 }
  0x11   : > { %vm339_vm0 = vcmask 7168   ;;  %v884_v0 = vmov 0.0  }
  0x12   : > { %338 = vst [vmem:[#allocation2] sm:$0xff] %v884_v0  ;;  %340 = vst.msk [vmem:[#allocation3] sm:$0xff] %vm339_vm0, %v884_v0 }
  0x13 PF: > { %v358_v1 = vld [vmem:[%s1142_s3 + $0x78] sm:$0xff]  ;;  %v885_v2 = vmov 0.0   ;;  %v357_v3 = vld [vmem:[%s1142_s3 + $0x70] sm:$0xff]  ;;  %vm886_vm1 = vmmov 0   ;;  %v356_v4 = vld [vmem:[%s1142_s3 + $0x68] sm:$0xff]  ;;  %v887_v36 = vmov 0   ;;  %v545_v50 = vlaneseq }
  0x14   : > { %751 = vmatprep.subr.mxu0 %v885_v2  ;;  %783 = vmatprep.mubr.msk.f32.mxu0 %vm886_vm1, %v885_v2  ;;  %v355_v5 = vld [vmem:[%s1142_s3 + $0x60] sm:$0xff]  ;;  %v447_v6 = vld [vmem:[%s1143_s4 + $0x78] sm:$0xff]  ;;  %v446_v7 = vld [vmem:[%s1143_s4 + $0x70] sm:$0xff]  ;;  %vm564_vm6 = vcmask 7168   ;;  %p712_p5 = scmp.ne.s32.totalorder %s940_s28, 7 }
  0x15   : > { %752 = vmatpush3.msra.mxu0 %v358_v1  ;;  %786 = vmatprep.subr.mxu1 %v885_v2  ;;  %v354_v8 = vld [vmem:[%s1142_s3 + $0x58] sm:$0xff]  ;;  %v445_v9 = vld [vmem:[%s1143_s4 + $0x68] sm:$0xff]  ;;  %v353_v10 = vld [vmem:[%s1142_s3 + $0x50] sm:$0xff]  ;;  %v546_v51 = vand.u32 127, %v545_v50 }
  0x16   : > { %753 = vmatprep.subr.mxu0 %v885_v2  ;;  %818 = vmatprep.mubr.msk.f32.mxu1 %vm886_vm1, %v885_v2  ;;  %v444_v11 = vld [vmem:[%s1143_s4 + $0x60] sm:$0xff]  ;;  %v352_v12 = vld [vmem:[%s1142_s3 + $0x48] sm:$0xff]  ;;  %v443_v13 = vld [vmem:[%s1143_s4 + $0x58] sm:$0xff] }
  0x17   : > { %754 = vmatpush3.msra.mxu0 %v357_v3  ;;  %787 = vmatpush3.msra.mxu1 %v447_v6  ;;  %v351_v14 = vld [vmem:[%s1142_s3 + $0x40] sm:$0xff]  ;;  %v442_v15 = vld [vmem:[%s1143_s4 + $0x50] sm:$0xff]  ;;  %v350_v16 = vld [vmem:[%s1142_s3 + $0x38] sm:$0xff] }
  0x18   : > { %755 = vmatprep.subr.mxu0 %v885_v2  ;;  %788 = vmatprep.subr.mxu1 %v885_v2  ;;  %v441_v17 = vld [vmem:[%s1143_s4 + $0x48] sm:$0xff]  ;;  %v349_v18 = vld [vmem:[%s1142_s3 + $0x30] sm:$0xff]  ;;  %v347_v20 = vld [vmem:[%s1142_s3 + $0x20] sm:$0xff] }
  0x19   : > { %756 = vmatpush3.msra.mxu0 %v356_v4  ;;  %789 = vmatpush3.msra.mxu1 %v446_v7  ;;  %v348_v19 = vld [vmem:[%s1142_s3 + $0x28] sm:$0xff]  ;;  %v346_v21 = vld [vmem:[%s1142_s3 + $0x18] sm:$0xff]  ;;  %v345_v22 = vld [vmem:[%s1142_s3 + $0x10] sm:$0xff] }
  0x1a   : > { %757 = vmatprep.subr.mxu0 %v885_v2  ;;  %790 = vmatprep.subr.mxu1 %v885_v2  ;;  %v344_v23 = vld [vmem:[%s1142_s3 + $0x8] sm:$0xff]  ;;  %v343_v24 = vld [vmem:[%s1142_s3] sm:$0xff]  ;;  %v439_v27 = vld [vmem:[%s1143_s4 + $0x38] sm:$0xff] }
  0x1b   : > { %758 = vmatpush3.msra.mxu0 %v355_v5  ;;  %791 = vmatpush3.msra.mxu1 %v445_v9  ;;  %v342_v25 = vld [vmem:[#allocation2] sm:$0xff]  ;;  %v438_v28 = vld [vmem:[%s1143_s4 + $0x30] sm:$0xff]  ;;  %v437_v29 = vld [vmem:[%s1143_s4 + $0x28] sm:$0xff] }
  0x1c   : > { %759 = vmatprep.subr.mxu0 %v885_v2  ;;  %792 = vmatprep.subr.mxu1 %v885_v2  ;;  %v440_v26 = vld [vmem:[%s1143_s4 + $0x40] sm:$0xff]  ;;  %v435_v31 = vld [vmem:[%s1143_s4 + $0x18] sm:$0xff]  ;;  %v434_v32 = vld [vmem:[%s1143_s4 + $0x10] sm:$0xff] }
  0x1d   : > { %760 = vmatpush3.msra.mxu0 %v354_v8  ;;  %793 = vmatpush3.msra.mxu1 %v444_v11  ;;  %v436_v30 = vld [vmem:[%s1143_s4 + $0x20] sm:$0xff]  ;;  %v433_v33 = vld [vmem:[%s1143_s4 + $0x8] sm:$0xff] }
  0x1e   : > { %761 = vmatprep.subr.mxu0 %v885_v2  ;;  %794 = vmatprep.subr.mxu1 %v885_v2  ;;  %v432_v34 = vld [vmem:[%s1143_s4] sm:$0xff] }
  0x1f   : > { %762 = vmatpush3.msra.mxu0 %v353_v10  ;;  %795 = vmatpush3.msra.mxu1 %v443_v13  ;;  %v547_v35 = vld [vmem:[%s329_s17] sm:$0xff]  ;;  %v561_v10 = vld [vmem:[#allocation3] sm:$0xff] }
  0x20   : > { %763 = vmatprep.subr.mxu0 %v885_v2  ;;  %796 = vmatprep.subr.mxu1 %v885_v2  ;;  %v341_v37 = vld [vmem:[%s321_s11] sm:$0xff]  ;;  %vm558_vm5 = vcmp.ge.s32.totalorder %v547_v35, 0 }
  0x21   : > { %764 = vmatpush3.msra.mxu0 %v352_v12  ;;  %797 = vmatpush3.msra.mxu1 %v442_v15  ;;  %v525_v42 = vld [vmem:[%s325_s14] sm:$0xff]  ;;  %v711_v7 = vsel %vm558_vm5, 1.0, %v885_v2 }
  0x22   : > { %765 = vmatprep.subr.mxu0 %v885_v2  ;;  %798 = vmatprep.subr.mxu1 %v885_v2  ;;  %v709_v43 = vld [vmem:[%s1145_s6] ss:$0 sm:$0xff] }
  0x23   : > { %766 = vmatpush3.msra.mxu0 %v351_v14  ;;  %799 = vmatpush3.msra.mxu1 %v441_v17  ;;  %v708_v44 = vld [vmem:[%s1144_s5] ss:$0 sm:$0xff]  ;;  %v533_v45 = vmul.f32 %v709_v43, %v525_v42 }
  0x24   : > { %767 = vmatprep.subr.mxu0 %v885_v2  ;;  %800 = vmatprep.subr.mxu1 %v885_v2 }
  0x25   : > { %768 = vmatpush3.msra.mxu0 %v350_v16  ;;  %801 = vmatpush3.msra.mxu1 %v440_v26 }
  0x26   : > { %769 = vmatprep.subr.mxu0 %v885_v2  ;;  %802 = vmatprep.subr.mxu1 %v885_v2 }
  0x27   : > { %770 = vmatpush3.msra.mxu0 %v349_v18  ;;  %803 = vmatpush3.msra.mxu1 %v439_v27 }
  0x28   : > { %771 = vmatprep.subr.mxu0 %v885_v2  ;;  %804 = vmatprep.subr.mxu1 %v885_v2 }
  0x29   : > { %772 = vmatpush3.msra.mxu0 %v348_v19  ;;  %805 = vmatpush3.msra.mxu1 %v438_v28 }
  0x2a   : > { %773 = vmatprep.subr.mxu0 %v885_v2  ;;  %806 = vmatprep.subr.mxu1 %v885_v2 }
  0x2b   : > { %774 = vmatpush3.msra.mxu0 %v347_v20  ;;  %807 = vmatpush3.msra.mxu1 %v437_v29 }
  0x2c   : > { %775 = vmatprep.subr.mxu0 %v885_v2  ;;  %808 = vmatprep.subr.mxu1 %v885_v2 }
  0x2d   : > { %776 = vmatpush3.msra.mxu0 %v346_v21  ;;  %809 = vmatpush3.msra.mxu1 %v436_v30 }
  0x2e   : > { %777 = vmatprep.subr.mxu0 %v885_v2  ;;  %810 = vmatprep.subr.mxu1 %v885_v2 }
  0x2f   : > { %778 = vmatpush3.msra.mxu0 %v345_v22  ;;  %811 = vmatpush3.msra.mxu1 %v435_v31 }
  0x30   : > { %779 = vmatprep.subr.mxu0 %v885_v2  ;;  %812 = vmatprep.subr.mxu1 %v885_v2 }
  0x31   : > { %780 = vmatpush3.msra.mxu0 %v344_v23  ;;  %813 = vmatpush3.msra.mxu1 %v434_v32 }
  0x32   : > { %781 = vmatprep.subr.mxu0 %v885_v2  ;;  %814 = vmatprep.subr.mxu1 %v885_v2 }
  0x33   : > { %782 = vmatpush3.msra.mxu0 %v343_v24  ;;  %815 = vmatpush3.msra.mxu1 %v433_v33 }
  0x34   : > { %784 = vmatmul.mubr.f32.vlgmr.msra.gmra.mxu0 %v342_v25  ;;  %816 = vmatprep.subr.mxu1 %v885_v2 }
  0x35   : > { %817 = vmatpush3.msra.mxu1 %v432_v34  ;;  %840 = vset.pattern.permute.xlu1 %v887_v36 }
  0x36   : > { %841 = vset.pattern.permute.xlu0 %v887_v36  ;;  %549 = vperm.xlu1 %840, %v547_v35  }
  0xb1   : > { %v550_v52 = vpop.permute.xlu1 %549 }
  0xb2   : > { %vm551_vm3 = vcmp.eq.s32.totalorder %v546_v51, %v550_v52 }
  0xb3   : > { %v710_v59 = vsel %vm551_vm3, 1.0, %v885_v2 }
  0xf4   : > { %v425_v38 = vpop.f32.mrf.mxu0 }
  0xf5   : > { %v429_v39 = vadd.f32 %v425_v38, %v341_v37 }
  0xf6   : > { %v785_v40 = vpop.f32.mrf.mxu0 }
  0xf7   : > { %842 = vtanh.f32 %v429_v39 }
 0x104   : > { %v843_v41 = vpop.eup %842 }
 0x105   : > { %431 = vst [vmem:[#allocation2] sm:$0xff] %v843_v41  ;;  %819 = vmatmul.mubr.f32.vlgmr.msra.gmra.mxu1 %v843_v41 }
 0x1c5   : > { %v521_v46 = vpop.f32.mrf.mxu1 }
 0x1c6   : > { %v522_v47 = vadd.f32 %v708_v44, %v521_v46 }
 0x1c7   : > { %v820_v48 = vpop.f32.mrf.mxu1 }
 0x1c8   : > { %v534_v49 = vadd.f32 %v533_v45, %v522_v47 }
 0x1ca   : > { %535 = vmax.xlane.f32.xlu0 %v534_v49  ;;  %v554_v60 = vmul.f32 %v710_v59, %v534_v49 }
 0x253   : > { %v536_v53 = vpop.xlane.xlu0 %535 }
 0x254   : > { %v537_v54 = vsub.f32 %v534_v49, %v536_v53  ;;  %vm566_vm2 = vcmp.eq.f32.partialorder %v534_v49, %v536_v53 }
 0x255   : > { %v567_v55 = vsel %vm566_vm2, %v546_v51, 128 }
 0x256   : > { %v538_v56 = vmul.f32 1.442695, %v537_v54  ;;  %v569_v57 = vshra.s32 %v567_v55, 16  ;;  %v568_v62 = vand.u32 65535, %v567_v55 }
 0x258   : > { %844 = vpow2.f32 %v538_v56  ;;  %v571_v58 = vcvt.s32.f32 %v569_v57  ;;  %v570_v0 = vcvt.s32.f32 %v568_v62 }
 0x25a   : > { %572 = vmin.xlane.f32.xlu0 %v571_v58 }
 0x25e   : > { %555 = vadd.xlane.f32.xlu0 %v554_v60 }
 0x265   : > { %v845_v61 = vpop.eup %844 }
 0x266   : > { %540 = vadd.xlane.f32.xlu1 %v845_v61 }
 0x2e3   : > { %v573_v63 = vpop.xlane.xlu0 %572 }
 0x2e4   : > { %vm574_vm4 = vcmp.eq.f32.partialorder %v571_v58, %v573_v63  ;;  %v579_v13 = vcvt.f32.s32 %v573_v63 }
 0x2e5   : > { %v575_v1 = vsel %vm574_vm4, %v570_v0, inf }
 0x2e6   : > { %576 = vmin.xlane.f32.xlu0 %v575_v1  ;;  %v580_v15 = vshll.u32 %v579_v13, 16 }
 0x2e7   : > { %v556_v8 = vpop.xlane.xlu0 %555 }
 0x2ef   : > { %v541_v3 = vpop.xlane.xlu1 %540 }
 0x2f0   : > { %846 = vlog2.f32 %v541_v3 }
 0x2fd   : > { %v847_v4 = vpop.eup %846 }
 0x2fe   : > { %v543_v5 = vmul.f32 0.6931472, %v847_v4 }
 0x300   : > { %v544_v6 = vadd.f32 %v543_v5, %v536_v53 }
 0x302   : > { %v557_v9 = vsub.f32 %v544_v6, %v556_v8 }
 0x304   : > { %v562_v11 = vmul.f32 %v711_v7, %v557_v9 }
 0x306   : > { %v563_v12 = vadd.f32 %v562_v11, %v561_v10 }
 0x308   : > { %565 = vst.msk [vmem:[#allocation3] sm:$0xff] %vm564_vm6, %v563_v12 }
 0x36f   : > { %v577_v14 = vpop.xlane.xlu0 %576 }
 0x370   : > { %v578_v16 = vcvt.f32.s32 %v577_v14  ;;  %586 = sbr.rel (%p712_p5) target bundleno = 900 (0x384), region = 56 }
 0x372   : > { %v581_v17 = vadd.s32 %v580_v15, %v578_v16 }
 0x374   : > { %582 = vst.msk [vmem:[%s333_s20] sm:$0xff] %vm564_vm6, %v581_v17 }
 0x375   : > { %v587_v2 = vld [vmem:[#allocation3] sm:$0xff]  ;;  %vm595_vm7 = vcmask 0  }
 0x376   : > { %v588_v18 = vsel %vm564_vm6, %v587_v2, 0.0 }
 0x377   : > { %v589_v19 = vrot.slane %v588_v18, 4 }
 0x379   : > { %v590_v20 = vadd.f32 %v589_v19, %v588_v18 }
 0x37b   : > { %v591_v21 = vrot.slane %v590_v20, 2 }
 0x37d   : > { %v592_v22 = vadd.f32 %v591_v21, %v590_v20 }
 0x37f   : > { %v593_v23 = vrot.slane %v592_v22, 1 }
 0x381   : > { %v594_v24 = vadd.f32 %v593_v23, %v592_v22 }
 0x383   : > { %596 = vst.msk [vmem:[#allocation4] sm:$0x1] %vm595_vm7, %v594_v24 }
 0x384 PF: > { %p825_p6 = scmp.eq.s32.totalorder %s940_s28, 7  ;;  %s888_s18 = smov [#allocation4]  }
 0x385   : > { %s611_s30 = sshll.u32 %s888_s18, 4  ;;  %s612_s30 = int_to_ptr.vmem [resolvable:$true] %s611_s30 }
 0x386   : > { %s848_s20 = scalar_lea.vmem %s612_s30, 16  ;;  %s854_s19 = scalar_lea.vmem %s612_s30, 32 }
 0x387   : > { %p849_p7 = scmp.ne.s32.totalorder %s612_s30, %s848_s20  ;;  %p855_p10 = scmp.lt.s32.totalorder %s612_s30, %s612_s30 }
 0x388   : > { %p856_p11 = scmp.lt.s32.totalorder %s854_s19, %s848_s20 }
 0x389   : > { %p850_p8 = pnand %p849_p7, %p825_p6 }
 0x38a   : > { %p857_p12 = por %p856_p11, %p855_p10 }
 0x38b   : > { %p851_p9 = pneg %p850_p8 }
 0x38d   : > { %p858_p13 = pnand %p857_p12, %p851_p9 }
 0x38f   : > { %861 = shalt.err (!%p858_p13)
}
 0x390   : > { %822 = dma.vmem_to_hbm [thread:$0]  (%p825_p6), %s612_s30, 16, %s1147_s8, [#allocation5]  }
 0x391   : > { %877 = dma.done.wait (%p825_p6), [#allocation5], 16  }
 0x392   : > { %879 = vsyncadd (%p825_p6), [#allocation5], 4294967280 }
 0x393 PF: > { %s20_s27 = sadd.s32 1, %s882_s27  }
 0x394   : > { %p17_p0 = scmp.ge.s32.totalorder %s20_s27, 10  }
 0x396   :  { %19 = sbr.rel (!%p17_p0) target bundleno = 1 (0x1), region = 101 }
 0x39b   :  { %631 = vsyncpa [#allocation5], 1 }
 0x39c   :  { %633 = vsyncpa [#allocation5 + $0x1], 1 }

</bundles_post_ra>
